<compile_context>
chip_gen: v5e
topology: v5e:2x2
jax: 0.10.0
libtpu: 0.0.40
codegen_flags: <defaults>
</compile_context>

<pallas_src>
import functools

import jax
import jax.numpy as jnp
from jax import lax
from jax.experimental import pallas as pl
from jax.experimental.pallas import tpu as pltpu


def _round_up(x, m):
    return ((x + m - 1) // m) * m


def _total_loss_block_kernel(logits_ref, targets_ref, out_ref, *, batch_size, needs_mask):
    """Per-batch-tile partial sums; batch rides the 128-lane axis.

    logits_ref : (C, W, tile_b)  native dtype -> cast to f32 in VMEM
    targets_ref: (W, tile_b)     int32 class ids
    out_ref    : (1, 2, 128)     f32; sublane 0 = CE partial sum, sublane 1 = sq-err partial sum
    """
    x = logits_ref[...].astype(jnp.float32)      # (C, W, tb)
    tgt = targets_ref[...]                       # (W, tb) int32
    C, W, tb = x.shape

    # Lane validity (only when B % tile_b != 0; padded lanes of the tail block are masked out
    # BEFORE any summation so garbage / NaN in out-of-bounds lanes cannot leak in).
    if needs_mask:
        lane_ids = pl.program_id(0) * tb + lax.broadcasted_iota(jnp.int32, (1, tb), 1)
        valid = lane_ids < batch_size            # (1, tb) bool
    else:
        valid = None

    # ---------------- cross entropy + argmax, unrolled over the small static class dim ----
    # All operands are (W, tb): W on sublanes, batch lane-dense. C is a handful of classes,
    # so the Python unroll is cheap; for very large C switch to reduction-based formulation.
    mx = x[0]
    for c in range(1, C):
        mx = jnp.maximum(mx, x[c])

    sum_exp = jnp.zeros_like(mx)
    tgt_logit = jnp.zeros_like(mx)
    best_val = x[0]
    pred = jnp.zeros((W, tb), jnp.int32)
    for c in range(C):
        xc = x[c]
        sum_exp = sum_exp + jnp.exp(xc - mx)
        tgt_logit = jnp.where(tgt == c, xc, tgt_logit)
        if c > 0:
            better = xc > best_val               # strict '>' -> first-occurrence tie-break
            best_val = jnp.where(better, xc, best_val)
            pred = jnp.where(better, c, pred)

    ce_rows = jnp.log(sum_exp) + mx - tgt_logit  # (W, tb) = logsumexp - logit[target]
    if needs_mask:
        ce_rows = jnp.where(valid, ce_rows, 0.0)
    ce_sum = jnp.sum(ce_rows)

    # ---------------- run-length scan over W: classes on sublanes, batch on lanes ----------
    cls = lax.broadcasted_iota(jnp.int32, (C, 1), 0)      # (C, 1)
    count_p = jnp.zeros((C, tb), jnp.float32)
    best_p = jnp.zeros((C, tb), jnp.float32)
    count_t = jnp.zeros((C, tb), jnp.float32)
    best_t = jnp.zeros((C, tb), jnp.float32)
    for t in range(W):                                    # W is a small static window -> unrolled
        p_row = pred[t:t + 1]                             # (1, tb)
        t_row = tgt[t:t + 1]                              # (1, tb)
        mp = (p_row == cls)                               # (C, tb) bool, built per step (no cube)
        mt = (t_row == cls)
        count_p = jnp.where(mp, count_p + 1.0, 0.0)
        best_p = jnp.maximum(best_p, count_p)
        count_t = jnp.where(mt, count_t + 1.0, 0.0)
        best_t = jnp.maximum(best_t, count_t)

    diff = best_p - best_t                                # (C, tb) max-run-length difference
    sq = diff * diff
    if needs_mask:
        sq = jnp.where(valid, sq, 0.0)
    sq_sum = jnp.sum(sq)

    # Lane-dense full-block store: sublane 0 <- ce_sum, sublane 1 <- sq_sum (broadcast on lanes).
    row_iota = lax.broadcasted_iota(jnp.int32, (1, 2, 128), 1)
    out_ref[...] = jnp.where(row_iota == 0, ce_sum, sq_sum)


def _pick_tile_b(B, W, C, itemsize, target_block_bytes=2 << 20):
    """Batch-tile (lane-dim) size for the (C, W, tile_b) logits block.

    Uses the PADDED VMEM footprint: W rounds up to the sublane granularity of the input's
    native dtype, tile_b sits on lanes.  tile_b must be a multiple of 128 when < B.
    Prefers >= 2 blocks once each half is still lane-dense (dual-TC parts, e.g. v7x).
    """
    itemsize = max(int(itemsize), 1)
    sublane = 8 * max(1, 4 // itemsize)                   # 8 (f32/i32), 16 (bf16), 32 (i8)
    padded_w = _round_up(W, sublane)
    bytes_per_b = C * padded_w * itemsize + _round_up(W, 8) * 4   # logits + int32 targets column
    budget = max(1, target_block_bytes // bytes_per_b)
    cap = B if B < 256 else _round_up((B + 1) // 2, 128)  # keep >=2 blocks when splittable
    tile_b = min(budget, cap)
    if tile_b >= B:
        return B
    return max(128, (tile_b // 128) * 128)


def _vmem_limit_bytes(tile_b, W, C, itemsize):
    """Scoped-VMEM request derived from the actual live set (2x margin, capped for v7x)."""
    itemsize = max(int(itemsize), 1)
    sublane = 8 * max(1, 4 // itemsize)
    logits_blk = C * _round_up(W, sublane) * tile_b * itemsize
    targets_blk = _round_up(W, 8) * tile_b * 4
    pipeline = 2 * (logits_blk + targets_blk)             # double-buffered input blocks
    # f32 working set: cast logits (C,W,tb) + a handful of (W,tb) and (C,tb) temporaries
    work = (C * _round_up(W, 8) + 6 * _round_up(W, 8) + 8 * C) * tile_b * 4
    limit = 2 * (pipeline + work) + (2 << 20)
    return int(min(48 * 1024 * 1024, max(16 * 1024 * 1024, limit)))


def total_loss_with_continuity(logits, targets, *, num_classes, lambda_continuity=0.1):
    """logits: (B, W, C) float (native dtype ok), targets: (B, W) integer class ids."""
    # TODO(synk): optional CrossEntropyLoss class_weights not implemented (module default is None).
    B, W, C = logits.shape
    assert C == num_classes, "classnum not match"
    if targets.dtype != jnp.int32:
        targets = targets.astype(jnp.int32)

    # Batch-minor presentation so batch rides the 128-lane axis inside the kernel.
    # (Layout plumbing: one XLA transpose pass; the kernel then streams lane-dense blocks.)
    logits_t = jnp.transpose(logits, (2, 1, 0))           # (C, W, B)
    targets_t = jnp.transpose(targets, (1, 0))            # (W, B)

    itemsize = jnp.dtype(logits.dtype).itemsize
    tile_b = _pick_tile_b(B, W, C, itemsize)
    num_blocks = (B + tile_b - 1) // tile_b
    needs_mask = (B % tile_b) != 0

    kernel = functools.partial(_total_loss_block_kernel,
                               batch_size=B, needs_mask=needs_mask)

    partials = pl.pallas_call(
        kernel,
        out_shape=jax.ShapeDtypeStruct((num_blocks, 2, 128), jnp.float32),
        grid_spec=pltpu.PrefetchScalarGridSpec(
            num_scalar_prefetch=0,
            grid=(num_blocks,),
            in_specs=[
                pl.BlockSpec((C, W, tile_b), lambda i: (0, 0, i)),
                pl.BlockSpec((W, tile_b), lambda i: (0, i)),
            ],
            out_specs=pl.BlockSpec((1, 2, 128), lambda i: (i, 0, 0)),
        ),
        compiler_params=pltpu.CompilerParams(
            dimension_semantics=("parallel",),             # distinct output block per step
            vmem_limit_bytes=_vmem_limit_bytes(tile_b, W, C, itemsize),
        ),
    )(logits_t, targets_t)

    ce_loss = jnp.sum(partials[:, 0, 0]) / float(B * W)    # CrossEntropyLoss (mean reduction)
    mse = jnp.sum(partials[:, 1, 0]) / float(B * C)        # MSELoss over (B, C) max run lengths
    return ce_loss + lambda_continuity * mse


# ------------------------- pure-JAX reference (for sanity check) -------------------------
def _reference(logits, targets, lambda_continuity=0.1):
    B, W, C = logits.shape
    logp = jax.nn.log_softmax(logits, axis=-1)
    ce = -jnp.mean(jnp.take_along_axis(logp, targets[..., None], axis=-1))

    pred_classes = jnp.argmax(logits, axis=-1)
    classes = jnp.arange(C)[None, :, None]
    pred_masks = (pred_classes[:, None, :] == classes).astype(jnp.float32)
    true_masks = (targets[:, None, :] == classes).astype(jnp.float32)

    def max_runs(m):  # m: (B, C, W)
        count = jnp.zeros((B, C))
        best = jnp.zeros((B, C))
        for t in range(W):
            count = (count + 1.0) * m[:, :, t]
            best = jnp.maximum(best, count)
        return best

    mse = jnp.mean((max_runs(pred_masks) - max_runs(true_masks)) ** 2)
    return ce + lambda_continuity * mse


if __name__ == "__main__":
    num_classes = 3

    # Exact tensors from the PyTorch spec (B=1, window=5, classes=3).
    preds_fixed = jnp.array([[[0.1, 0.7, 0.2], [0.9, 0.1, 0.1], [0.7, 0.2, 0.1],
                              [0.6, 0.3, 0.1], [0.1, 0.9, 0.0]]], dtype=jnp.float32)
    tgts_fixed = jnp.array([[1, 0, 0, 0, 1]], dtype=jnp.int32)
    loss_fixed = jax.block_until_ready(
        total_loss_with_continuity(preds_fixed, tgts_fixed, num_classes=3,
                                   lambda_continuity=0.1))
    ref_fixed = _reference(preds_fixed, tgts_fixed, 0.1)
    assert jnp.allclose(loss_fixed, ref_fixed, atol=1e-5, rtol=1e-5), (loss_fixed, ref_fixed)

    # Small random case.
    key = jax.random.PRNGKey(0)
    k1, k2 = jax.random.split(key)
    B, W = 2, 8
    logits = jax.random.normal(k1, (B, W, num_classes), dtype=jnp.float32)
    targets = jax.random.randint(k2, (B, W), 0, num_classes, dtype=jnp.int32)
    loss = jax.block_until_ready(
        total_loss_with_continuity(logits, targets, num_classes=num_classes,
                                   lambda_continuity=0.1))
    ref = _reference(logits, targets, 0.1)
    assert jnp.allclose(loss, ref, atol=1e-5, rtol=1e-5), (loss, ref)

    # Multi-block + masked-tail path (two lane tiles of 256, tail lanes masked out).
    B2, W2 = 260, 5
    k3, k4 = jax.random.split(k2)
    logits2 = jax.random.normal(k3, (B2, W2, num_classes), dtype=jnp.float32)
    targets2 = jax.random.randint(k4, (B2, W2), 0, num_classes, dtype=jnp.int32)
    loss2 = jax.block_until_ready(
        total_loss_with_continuity(logits2, targets2, num_classes=num_classes,
                                   lambda_continuity=0.1))
    ref2 = _reference(logits2, targets2, 0.1)
    assert jnp.allclose(loss2, ref2, atol=1e-4, rtol=1e-4), (loss2, ref2)

    print("KERNEL_OK")
</pallas_src>

<mosaic_0001>
module attributes {stable_mosaic.version = 11 : i64} {
  func.func @_total_loss_block_kernel(%arg0: i32, %arg1: memref<3x5x1xf32, #tpu.memory_space<vmem>>, %arg2: memref<5x1xi32, #tpu.memory_space<vmem>>, %arg3: memref<1x2x128xf32, #tpu.memory_space<vmem>>) attributes {dimension_semantics = [#tpu.dimension_semantics<parallel>], iteration_bounds = array<i64: 1>, scalar_prefetch = 0 : i64, scratch_operands = 0 : i64, tpu.core_type = #tpu.core_type<tc>, window_params = [{transform_indices = @transform_0, window_bounds = array<i64: 3, 5, 1>}, {transform_indices = @transform_1, window_bounds = array<i64: 5, 1>}, {transform_indices = @transform_2, window_bounds = array<i64: 1, 2, 128>}]} {
    %c0 = arith.constant 0 : index
    %c0_0 = arith.constant 0 : index
    %c0_1 = arith.constant 0 : index
    %0 = vector.load %arg1[%c0, %c0_0, %c0_1] : memref<3x5x1xf32, #tpu.memory_space<vmem>>, vector<3x5x1xf32>
    %c0_2 = arith.constant 0 : index
    %c0_3 = arith.constant 0 : index
    %1 = vector.load %arg2[%c0_2, %c0_3] : memref<5x1xi32, #tpu.memory_space<vmem>>, vector<5x1xi32>
    %2 = vector.extract_strided_slice %0 {offsets = [0, 0, 0], sizes = [1, 5, 1], strides = [1, 1, 1]} : vector<3x5x1xf32> to vector<1x5x1xf32>
    %3 = vector.shape_cast %2 : vector<1x5x1xf32> to vector<5x1xf32>
    %4 = vector.extract_strided_slice %0 {offsets = [1, 0, 0], sizes = [1, 5, 1], strides = [1, 1, 1]} : vector<3x5x1xf32> to vector<1x5x1xf32>
    %5 = vector.shape_cast %4 : vector<1x5x1xf32> to vector<5x1xf32>
    %6 = arith.maximumf %3, %5 : vector<5x1xf32>
    %7 = vector.extract_strided_slice %0 {offsets = [2, 0, 0], sizes = [1, 5, 1], strides = [1, 1, 1]} : vector<3x5x1xf32> to vector<1x5x1xf32>
    %8 = vector.shape_cast %7 : vector<1x5x1xf32> to vector<5x1xf32>
    %9 = arith.maximumf %6, %8 : vector<5x1xf32>
    %cst = arith.constant 0.000000e+00 : f32
    %10 = vector.broadcast %cst : f32 to vector<5x1xf32>
    %cst_4 = arith.constant 0.000000e+00 : f32
    %11 = vector.broadcast %cst_4 : f32 to vector<5x1xf32>
    %12 = vector.extract_strided_slice %0 {offsets = [0, 0, 0], sizes = [1, 5, 1], strides = [1, 1, 1]} : vector<3x5x1xf32> to vector<1x5x1xf32>
    %13 = vector.shape_cast %12 : vector<1x5x1xf32> to vector<5x1xf32>
    %c0_i32 = arith.constant 0 : i32
    %14 = vector.broadcast %c0_i32 : i32 to vector<5x1xi32>
    %15 = vector.extract_strided_slice %0 {offsets = [0, 0, 0], sizes = [1, 5, 1], strides = [1, 1, 1]} : vector<3x5x1xf32> to vector<1x5x1xf32>
    %16 = vector.shape_cast %15 : vector<1x5x1xf32> to vector<5x1xf32>
    %17 = arith.subf %16, %9 : vector<5x1xf32>
    %18 = math.exp %17 : vector<5x1xf32>
    %19 = arith.addf %10, %18 : vector<5x1xf32>
    %c0_i32_5 = arith.constant 0 : i32
    %20 = vector.broadcast %c0_i32_5 : i32 to vector<5x1xi32>
    %21 = arith.cmpi eq, %1, %20 : vector<5x1xi32>
    %22 = arith.select %21, %16, %11 : vector<5x1xi1>, vector<5x1xf32>
    %23 = vector.extract_strided_slice %0 {offsets = [1, 0, 0], sizes = [1, 5, 1], strides = [1, 1, 1]} : vector<3x5x1xf32> to vector<1x5x1xf32>
    %24 = vector.shape_cast %23 : vector<1x5x1xf32> to vector<5x1xf32>
    %25 = arith.subf %24, %9 : vector<5x1xf32>
    %26 = math.exp %25 : vector<5x1xf32>
    %27 = arith.addf %19, %26 : vector<5x1xf32>
    %c1_i32 = arith.constant 1 : i32
    %28 = vector.broadcast %c1_i32 : i32 to vector<5x1xi32>
    %29 = arith.cmpi eq, %1, %28 : vector<5x1xi32>
    %30 = arith.select %29, %24, %22 : vector<5x1xi1>, vector<5x1xf32>
    %31 = arith.cmpf ogt, %24, %13 : vector<5x1xf32>
    %32 = arith.select %31, %24, %13 : vector<5x1xi1>, vector<5x1xf32>
    %c1_i32_6 = arith.constant 1 : i32
    %33 = vector.broadcast %c1_i32_6 : i32 to vector<5x1xi32>
    %34 = arith.select %31, %33, %14 : vector<5x1xi1>, vector<5x1xi32>
    %35 = vector.extract_strided_slice %0 {offsets = [2, 0, 0], sizes = [1, 5, 1], strides = [1, 1, 1]} : vector<3x5x1xf32> to vector<1x5x1xf32>
    %36 = vector.shape_cast %35 : vector<1x5x1xf32> to vector<5x1xf32>
    %37 = arith.subf %36, %9 : vector<5x1xf32>
    %38 = math.exp %37 : vector<5x1xf32>
    %39 = arith.addf %27, %38 : vector<5x1xf32>
    %c2_i32 = arith.constant 2 : i32
    %40 = vector.broadcast %c2_i32 : i32 to vector<5x1xi32>
    %41 = arith.cmpi eq, %1, %40 : vector<5x1xi32>
    %42 = arith.select %41, %36, %30 : vector<5x1xi1>, vector<5x1xf32>
    %43 = arith.cmpf ogt, %36, %32 : vector<5x1xf32>
    %c2_i32_7 = arith.constant 2 : i32
    %44 = vector.broadcast %c2_i32_7 : i32 to vector<5x1xi32>
    %45 = arith.select %43, %44, %34 : vector<5x1xi1>, vector<5x1xi32>
    %46 = math.log %39 : vector<5x1xf32>
    %47 = arith.addf %46, %9 : vector<5x1xf32>
    %48 = arith.subf %47, %42 : vector<5x1xf32>
    %49 = vector.shape_cast %48 : vector<5x1xf32> to vector<1x5x1xf32>
    %cst_8 = arith.constant dense<0.000000e+00> : vector<1xf32>
    %50 = vector.multi_reduction <add>, %49, %cst_8 [1, 2] : vector<1x5x1xf32> to vector<1xf32>
    %51 = vector.shape_cast %50 : vector<1xf32> to vector<1x1x1xf32>
    %52 = vector.extract %51[0, 0, 0] : f32 from vector<1x1x1xf32>
    %53 = tpu.iota {dimensions = array<i32: 0>} : vector<3x1xi32>
    %cst_9 = arith.constant 0.000000e+00 : f32
    %54 = vector.broadcast %cst_9 : f32 to vector<3x1xf32>
    %cst_10 = arith.constant 0.000000e+00 : f32
    %55 = vector.broadcast %cst_10 : f32 to vector<3x1xf32>
    %cst_11 = arith.constant 0.000000e+00 : f32
    %56 = vector.broadcast %cst_11 : f32 to vector<3x1xf32>
    %cst_12 = arith.constant 0.000000e+00 : f32
    %57 = vector.broadcast %cst_12 : f32 to vector<3x1xf32>
    %58 = vector.extract_strided_slice %45 {offsets = [0, 0], sizes = [1, 1], strides = [1, 1]} : vector<5x1xi32> to vector<1x1xi32>
    %59 = vector.extract_strided_slice %1 {offsets = [0, 0], sizes = [1, 1], strides = [1, 1]} : vector<5x1xi32> to vector<1x1xi32>
    %60 = vector.broadcast %58 : vector<1x1xi32> to vector<3x1xi32>
    %61 = arith.cmpi eq, %60, %53 : vector<3x1xi32>
    %62 = vector.broadcast %59 : vector<1x1xi32> to vector<3x1xi32>
    %63 = arith.cmpi eq, %62, %53 : vector<3x1xi32>
    %cst_13 = arith.constant 1.000000e+00 : f32
    %64 = vector.broadcast %cst_13 : f32 to vector<3x1xf32>
    %65 = arith.addf %54, %64 : vector<3x1xf32>
    %cst_14 = arith.constant 0.000000e+00 : f32
    %66 = vector.broadcast %cst_14 : f32 to vector<3x1xf32>
    %67 = arith.select %61, %65, %66 : vector<3x1xi1>, vector<3x1xf32>
    %68 = arith.maximumf %55, %67 : vector<3x1xf32>
    %cst_15 = arith.constant 1.000000e+00 : f32
    %69 = vector.broadcast %cst_15 : f32 to vector<3x1xf32>
    %70 = arith.addf %56, %69 : vector<3x1xf32>
    %cst_16 = arith.constant 0.000000e+00 : f32
    %71 = vector.broadcast %cst_16 : f32 to vector<3x1xf32>
    %72 = arith.select %63, %70, %71 : vector<3x1xi1>, vector<3x1xf32>
    %73 = arith.maximumf %57, %72 : vector<3x1xf32>
    %74 = vector.extract_strided_slice %45 {offsets = [1, 0], sizes = [1, 1], strides = [1, 1]} : vector<5x1xi32> to vector<1x1xi32>
    %75 = vector.extract_strided_slice %1 {offsets = [1, 0], sizes = [1, 1], strides = [1, 1]} : vector<5x1xi32> to vector<1x1xi32>
    %76 = vector.broadcast %74 : vector<1x1xi32> to vector<3x1xi32>
    %77 = arith.cmpi eq, %76, %53 : vector<3x1xi32>
    %78 = vector.broadcast %75 : vector<1x1xi32> to vector<3x1xi32>
    %79 = arith.cmpi eq, %78, %53 : vector<3x1xi32>
    %cst_17 = arith.constant 1.000000e+00 : f32
    %80 = vector.broadcast %cst_17 : f32 to vector<3x1xf32>
    %81 = arith.addf %67, %80 : vector<3x1xf32>
    %cst_18 = arith.constant 0.000000e+00 : f32
    %82 = vector.broadcast %cst_18 : f32 to vector<3x1xf32>
    %83 = arith.select %77, %81, %82 : vector<3x1xi1>, vector<3x1xf32>
    %84 = arith.maximumf %68, %83 : vector<3x1xf32>
    %cst_19 = arith.constant 1.000000e+00 : f32
    %85 = vector.broadcast %cst_19 : f32 to vector<3x1xf32>
    %86 = arith.addf %72, %85 : vector<3x1xf32>
    %cst_20 = arith.constant 0.000000e+00 : f32
    %87 = vector.broadcast %cst_20 : f32 to vector<3x1xf32>
    %88 = arith.select %79, %86, %87 : vector<3x1xi1>, vector<3x1xf32>
    %89 = arith.maximumf %73, %88 : vector<3x1xf32>
    %90 = vector.extract_strided_slice %45 {offsets = [2, 0], sizes = [1, 1], strides = [1, 1]} : vector<5x1xi32> to vector<1x1xi32>
    %91 = vector.extract_strided_slice %1 {offsets = [2, 0], sizes = [1, 1], strides = [1, 1]} : vector<5x1xi32> to vector<1x1xi32>
    %92 = vector.broadcast %90 : vector<1x1xi32> to vector<3x1xi32>
    %93 = arith.cmpi eq, %92, %53 : vector<3x1xi32>
    %94 = vector.broadcast %91 : vector<1x1xi32> to vector<3x1xi32>
    %95 = arith.cmpi eq, %94, %53 : vector<3x1xi32>
    %cst_21 = arith.constant 1.000000e+00 : f32
    %96 = vector.broadcast %cst_21 : f32 to vector<3x1xf32>
    %97 = arith.addf %83, %96 : vector<3x1xf32>
    %cst_22 = arith.constant 0.000000e+00 : f32
    %98 = vector.broadcast %cst_22 : f32 to vector<3x1xf32>
    %99 = arith.select %93, %97, %98 : vector<3x1xi1>, vector<3x1xf32>
    %100 = arith.maximumf %84, %99 : vector<3x1xf32>
    %cst_23 = arith.constant 1.000000e+00 : f32
    %101 = vector.broadcast %cst_23 : f32 to vector<3x1xf32>
    %102 = arith.addf %88, %101 : vector<3x1xf32>
    %cst_24 = arith.constant 0.000000e+00 : f32
    %103 = vector.broadcast %cst_24 : f32 to vector<3x1xf32>
    %104 = arith.select %95, %102, %103 : vector<3x1xi1>, vector<3x1xf32>
    %105 = arith.maximumf %89, %104 : vector<3x1xf32>
    %106 = vector.extract_strided_slice %45 {offsets = [3, 0], sizes = [1, 1], strides = [1, 1]} : vector<5x1xi32> to vector<1x1xi32>
    %107 = vector.extract_strided_slice %1 {offsets = [3, 0], sizes = [1, 1], strides = [1, 1]} : vector<5x1xi32> to vector<1x1xi32>
    %108 = vector.broadcast %106 : vector<1x1xi32> to vector<3x1xi32>
    %109 = arith.cmpi eq, %108, %53 : vector<3x1xi32>
    %110 = vector.broadcast %107 : vector<1x1xi32> to vector<3x1xi32>
    %111 = arith.cmpi eq, %110, %53 : vector<3x1xi32>
    %cst_25 = arith.constant 1.000000e+00 : f32
    %112 = vector.broadcast %cst_25 : f32 to vector<3x1xf32>
    %113 = arith.addf %99, %112 : vector<3x1xf32>
    %cst_26 = arith.constant 0.000000e+00 : f32
    %114 = vector.broadcast %cst_26 : f32 to vector<3x1xf32>
    %115 = arith.select %109, %113, %114 : vector<3x1xi1>, vector<3x1xf32>
    %116 = arith.maximumf %100, %115 : vector<3x1xf32>
    %cst_27 = arith.constant 1.000000e+00 : f32
    %117 = vector.broadcast %cst_27 : f32 to vector<3x1xf32>
    %118 = arith.addf %104, %117 : vector<3x1xf32>
    %cst_28 = arith.constant 0.000000e+00 : f32
    %119 = vector.broadcast %cst_28 : f32 to vector<3x1xf32>
    %120 = arith.select %111, %118, %119 : vector<3x1xi1>, vector<3x1xf32>
    %121 = arith.maximumf %105, %120 : vector<3x1xf32>
    %122 = vector.extract_strided_slice %45 {offsets = [4, 0], sizes = [1, 1], strides = [1, 1]} : vector<5x1xi32> to vector<1x1xi32>
    %123 = vector.extract_strided_slice %1 {offsets = [4, 0], sizes = [1, 1], strides = [1, 1]} : vector<5x1xi32> to vector<1x1xi32>
    %124 = vector.broadcast %122 : vector<1x1xi32> to vector<3x1xi32>
    %125 = arith.cmpi eq, %124, %53 : vector<3x1xi32>
    %126 = vector.broadcast %123 : vector<1x1xi32> to vector<3x1xi32>
    %127 = arith.cmpi eq, %126, %53 : vector<3x1xi32>
    %cst_29 = arith.constant 1.000000e+00 : f32
    %128 = vector.broadcast %cst_29 : f32 to vector<3x1xf32>
    %129 = arith.addf %115, %128 : vector<3x1xf32>
    %cst_30 = arith.constant 0.000000e+00 : f32
    %130 = vector.broadcast %cst_30 : f32 to vector<3x1xf32>
    %131 = arith.select %125, %129, %130 : vector<3x1xi1>, vector<3x1xf32>
    %132 = arith.maximumf %116, %131 : vector<3x1xf32>
    %cst_31 = arith.constant 1.000000e+00 : f32
    %133 = vector.broadcast %cst_31 : f32 to vector<3x1xf32>
    %134 = arith.addf %120, %133 : vector<3x1xf32>
    %cst_32 = arith.constant 0.000000e+00 : f32
    %135 = vector.broadcast %cst_32 : f32 to vector<3x1xf32>
    %136 = arith.select %127, %134, %135 : vector<3x1xi1>, vector<3x1xf32>
    %137 = arith.maximumf %121, %136 : vector<3x1xf32>
    %138 = arith.subf %132, %137 : vector<3x1xf32>
    %139 = arith.mulf %138, %138 : vector<3x1xf32>
    %140 = vector.shape_cast %139 : vector<3x1xf32> to vector<1x3x1xf32>
    %cst_33 = arith.constant dense<0.000000e+00> : vector<1xf32>
    %141 = vector.multi_reduction <add>, %140, %cst_33 [1, 2] : vector<1x3x1xf32> to vector<1xf32>
    %142 = vector.shape_cast %141 : vector<1xf32> to vector<1x1x1xf32>
    %143 = vector.extract %142[0, 0, 0] : f32 from vector<1x1x1xf32>
    %144 = tpu.iota {dimensions = array<i32: 1>} : vector<1x2x128xi32>
    %c0_i32_34 = arith.constant 0 : i32
    %145 = vector.broadcast %c0_i32_34 : i32 to vector<1x2x128xi32>
    %146 = arith.cmpi eq, %144, %145 : vector<1x2x128xi32>
    %147 = vector.broadcast %52 : f32 to vector<1x2x128xf32>
    %148 = vector.broadcast %143 : f32 to vector<1x2x128xf32>
    %149 = arith.select %146, %147, %148 : vector<1x2x128xi1>, vector<1x2x128xf32>
    %c0_35 = arith.constant 0 : index
    %c0_36 = arith.constant 0 : index
    %c0_37 = arith.constant 0 : index
    %150 = vector.load %arg3[%c0_35, %c0_36, %c0_37] : memref<1x2x128xf32, #tpu.memory_space<vmem>>, vector<1x2x128xf32>
    tpu.vector_store %arg3[%c0_35, %c0_36, %c0_37], %149 {strides = array<i32>} : memref<1x2x128xf32, #tpu.memory_space<vmem>>, vector<1x2x128xf32>,
    return
  }
  func.func @transform_0(%arg0: i32) -> (i32, i32, i32) {
    %c0_i32 = arith.constant 0 : i32
    %c0_i32_0 = arith.constant 0 : i32
    %c0_i32_1 = arith.constant 0 : i32
    return %c0_i32, %c0_i32_0, %arg0 : i32, i32, i32
  }
  func.func @transform_1(%arg0: i32) -> (i32, i32) {
    %c0_i32 = arith.constant 0 : i32
    %c0_i32_0 = arith.constant 0 : i32
    return %c0_i32, %arg0 : i32, i32
  }
  func.func @transform_2(%arg0: i32) -> (i32, i32, i32) {
    %c0_i32 = arith.constant 0 : i32
    %c0_i32_0 = arith.constant 0 : i32
    %c0_i32_1 = arith.constant 0 : i32
    return %arg0, %c0_i32, %c0_i32_0 : i32, i32, i32
  }
}

</mosaic_0001>

<bundles_post_ra>
// kernel: tpu_custom_call.1
= control target key start
LH: loop header
LB: loop body
LE: loop exit
PB: predicated region body
PF: predicated region fallthrough
CT: control target
= control target key end

     0   :  { %v56_v3 = vlaneseq  ;;  %s263_s0 = inlined_call_operand.vmem [shape: f32[3,5,1], index: 0, kind: input, shape index: {}]   ;;  %s264_s1 = inlined_call_operand.vmem [shape: s32[5,1], index: 1, kind: input, shape index: {}]   ;;  %s265_s2 = inlined_call_operand.hbm [shape: f32[1,2,128], index: 2, kind: output, shape index: {}]  }
   0x1   :  { %v202_v0 = vld [vmem:[%s263_s0] sm:$0x1f]  ;;  %v207_v1 = vld [vmem:[%s263_s0 + $0x8] sm:$0x1f]  ;;  %v212_v2 = vld [vmem:[%s263_s0 + $0x10] sm:$0x1f] }
   0x2   :  { %v217_v4 = vld [vmem:[%s264_s1] sm:$0x1f]  ;;  %v16_v5 = vmax.f32 %v202_v0, %v207_v1  ;;  %vm30_vm0 = vcmp.gt.f32.partialorder %v207_v1, %v202_v0 }
   0x3   :  { %7 = vsyncpa [#allocation3], 0  ;;  %v31_v6 = vsel %vm30_vm0, %v207_v1, %v202_v0  ;;  %v181_v7 = vmov 0   ;;  %v229_v11 = vshrl.u32 %v56_v3, 7  ;;  %v60_v12 = vperm.slane %v217_v4, 0  ;;  %s183_s0 = smov [#allocation2]  }
   0x4   :  { %v32_v8 = vsel %vm30_vm0, 1, %v181_v7  ;;  %v226_v9 = vmax.f32 %v16_v5, %v212_v2  ;;  %vm39_vm1 = vcmp.gt.f32.partialorder %v212_v2, %v31_v6  ;;  %v182_v21 = vmov 0.0   ;;  %s129_s1 = sshll.u32 %s183_s0, 4  ;;  %s131_s20 = sshll.u32 %s265_s2, 4  ;;  %s130_s1 = int_to_ptr.vmem [resolvable:$true] %s129_s1  ;;  %s132_s20 = int_to_ptr.hbm [resolvable:$true] %s131_s20 }
   0x5   :  { %v40_v10 = vsel %vm39_vm1, 2, %v32_v8  ;;  %vm61_vm2 = vcmp.eq.s32.totalorder %v60_v12, %v229_v11  ;;  %v68_v23 = vperm.slane %v217_v4, 1  ;;  %v78_v30 = vperm.slane %v217_v4, 2 }
   0x6   :  { %v18_v13 = vsub.f32 %v202_v0, %v226_v9  ;;  %v24_v14 = vsub.f32 %v207_v1, %v226_v9  ;;  %v33_v15 = vsub.f32 %v212_v2, %v226_v9  ;;  %v58_v16 = vperm.slane %v40_v10, 0 }
   0x7   :  { %v66_v17 = vperm.slane %v40_v10, 1  ;;  %v64_v22 = vsel %vm61_vm2, 1.0, %v182_v21  ;;  %vm69_vm5 = vcmp.eq.s32.totalorder %v68_v23, %v229_v11  ;;  %v76_v29 = vperm.slane %v40_v10, 2 }
   0x8   :  { %v19_v18 = vmul.f32 1.442695, %v18_v13  ;;  %v25_v19 = vmul.f32 1.442695, %v24_v14  ;;  %v34_v20 = vmul.f32 1.442695, %v33_v15  ;;  %vm59_vm3 = vcmp.eq.s32.totalorder %v58_v16, %v229_v11 }
   0x9   :  { %v62_v24 = vsel %vm59_vm3, 1.0, %v182_v21  ;;  %vm67_vm4 = vcmp.eq.s32.totalorder %v66_v17, %v229_v11  ;;  %v73_v25 = vadd.f32 1.0, %v64_v22  ;;  %v65_v26 = vmax.f32 %v64_v22, 0.0 }
   0xa   :  { %147 = vpow2.f32 %v19_v18  ;;  %v70_v27 = vadd.f32 1.0, %v62_v24  ;;  %v63_v31 = vmax.f32 %v62_v24, 0.0  ;;  %v86_v34 = vperm.slane %v40_v10, 3 }
   0xb   :  { %149 = vpow2.f32 %v25_v19  ;;  %v74_v28 = vsel %vm69_vm5, %v73_v25, 0.0  ;;  %vm77_vm6 = vcmp.eq.s32.totalorder %v76_v29, %v229_v11  ;;  %vm79_vm7 = vcmp.eq.s32.totalorder %v78_v30, %v229_v11 }
   0xc   :  { %151 = vpow2.f32 %v34_v20  ;;  %v71_v32 = vsel %vm67_vm4, %v70_v27, 0.0  ;;  %v83_v33 = vadd.f32 1.0, %v74_v28  ;;  %v88_v37 = vperm.slane %v217_v4, 3 }
   0xd   :  { %v80_v35 = vadd.f32 1.0, %v71_v32  ;;  %vm87_vm8 = vcmp.eq.s32.totalorder %v86_v34, %v229_v11  ;;  %v72_v42 = vmax.f32 %v63_v31, %v71_v32  ;;  %v75_v43 = vmax.f32 %v65_v26, %v74_v28 }
   0xe   :  { %v84_v36 = vsel %vm79_vm7, %v83_v33, 0.0  ;;  %vm89_vm9 = vcmp.eq.s32.totalorder %v88_v37, %v229_v11  ;;  %v96_v49 = vperm.slane %v40_v10, 4  ;;  %v98_v50 = vperm.slane %v217_v4, 4 }
   0xf   :  { %v81_v39 = vsel %vm77_vm6, %v80_v35, 0.0  ;;  %v93_v40 = vadd.f32 1.0, %v84_v36  ;;  %vm22_vm10 = vcmp.eq.s32.totalorder %v217_v4, 0  ;;  %v85_v53 = vmax.f32 %v75_v43, %v84_v36 }
  0x10   :  { %v148_v38 = vpop.eup %147  ;;  %v90_v44 = vadd.f32 1.0, %v81_v39  ;;  %v82_v52 = vmax.f32 %v72_v42, %v81_v39  ;;  %vm97_vm11 = vcmp.eq.s32.totalorder %v96_v49, %v229_v11  ;;  %vm99_vm12 = vcmp.eq.s32.totalorder %v98_v50, %v229_v11 }
  0x11   :  { %v150_v41 = vpop.eup %149  ;;  %v94_v48 = vsel %vm89_vm9, %v93_v40, 0.0  ;;  %v23_v56 = vsel %vm22_vm10, %v202_v0, 0.0  ;;  %vm28_vm13 = vcmp.eq.s32.totalorder %v217_v4, 1  ;;  %vm37_vm14 = vcmp.eq.s32.totalorder %v217_v4, 2 }
  0x12   :  { %v152_v45 = vpop.eup %151  ;;  %v27_v46 = vadd.f32 %v150_v41, %v148_v38  ;;  %v91_v47 = vsel %vm87_vm8, %v90_v44, 0.0  ;;  %v103_v55 = vadd.f32 1.0, %v94_v48  ;;  %v95_v58 = vmax.f32 %v85_v53, %v94_v48 }
  0x13   :  { %v100_v54 = vadd.f32 1.0, %v91_v47  ;;  %v92_v57 = vmax.f32 %v82_v52, %v91_v47  ;;  %v29_v61 = vsel %vm28_vm13, %v207_v1, %v23_v56  ;;  %vm45_vm15 = vcmask 4096  }
  0x14   :  { %v36_v51 = vadd.f32 %v152_v45, %v27_v46  ;;  %v104_v60 = vsel %vm99_vm12, %v103_v55, 0.0  ;;  %v38_v6 = vsel %vm37_vm14, %v212_v2, %v29_v61  ;;  %vm108_vm0 = vcmask 2048  }
  0x15   :  { %v101_v59 = vsel %vm97_vm11, %v100_v54, 0.0  ;;  %v105_v5 = vmax.f32 %v95_v58, %v104_v60  ;;  %vm119_vm1 = vcmp.eq.s32.totalorder %v229_v11, 0 }
  0x16   :  { %153 = vlog2.f32 %v36_v51  ;;  %v102_v3 = vmax.f32 %v92_v57, %v101_v59 }
  0x18   :  { %v106_v8 = vsub.f32 %v102_v3, %v105_v5 }
  0x1a   :  { %v107_v12 = vmul.f32 %v106_v8, %v106_v8 }
  0x1c   :  { %v154_v62 = vpop.eup %153  ;;  %v109_v13 = vsel %vm108_vm0, %v107_v12, 0.0 }
  0x1d   :  { %v42_v63 = vmul.f32 0.6931472, %v154_v62 }
  0x1f   :  { %v43_v7 = vadd.f32 %v42_v63, %v226_v9 }
  0x21   :  { %v44_v0 = vsub.f32 %v43_v7, %v38_v6 }
  0x23   :  { %v46_v10 = vsel %vm45_vm15, %v44_v0, 0.0 }
  0x24   :  { %47 = vadd.xlane.f32.xlu0 %v46_v10 }
  0x2c   :  { %110 = vadd.xlane.f32.xlu0 %v109_v13 }
  0x97   :  { %v48_v1 = vpop.xlane.xlu0 %47 }
  0x98   :  { %v49_v14 = vrot.slane %v48_v1, 4 }
  0x9a   :  { %v50_v4 = vadd.f32 %v49_v14, %v48_v1 }
  0x9c   :  { %v51_v15 = vrot.slane %v50_v4, 2 }
  0x9e   :  { %v52_v16 = vadd.f32 %v51_v15, %v50_v4 }
  0x9f   :  { %v111_v17 = vpop.xlane.xlu0 %110 }
  0xa0   :  { %v112_v18 = vrot.slane %v111_v17, 4  ;;  %v53_v19 = vrot.slane %v52_v16, 1 }
  0xa2   :  { %v113_v2 = vadd.f32 %v112_v18, %v111_v17  ;;  %v54_v20 = vadd.f32 %v53_v19, %v52_v16 }
  0xa4   :  { %v114_v9 = vrot.slane %v113_v2, 2  ;;  %140 = vpush %v54_v20 }
  0xa6   :  { %v115_v21 = vadd.f32 %v114_v9, %v113_v2 }
  0xa8   :  { %v116_v22 = vrot.slane %v115_v21, 1 }
  0xaa   :  { %v117_v23 = vadd.f32 %v116_v22, %v115_v21 }
  0xac   :  { %142 = vpush %v117_v23 }
  0xd5   :  { %s141_s17 = spop %140 }
  0xd6   :  { %v120_v24 = vstv %s141_s17 }
  0xdd   :  { %s143_s21 = spop %142 }
  0xde   :  { %v121_v25 = vstv %s143_s21 }
  0xdf   :  { %v122_v26 = vsel %vm119_vm1, %v120_v24, %v121_v25 }
  0xe0   :  { %123 = vst [vmem:[#allocation2] sm:$0x3] %v122_v26 }
  0xe1   :  { %134 = dma.vmem_to_hbm [thread:$0]  %s130_s1, 32, %s132_s20, [#allocation3]  }
  0xe2   :  { %179 = dma.done.wait [#allocation3], 32  }
  0xe3   :  { %180 = vsyncadd [#allocation3], 4294967264 }
  0xe4   :  { %139 = vsyncpa [#allocation3], 1 }

</bundles_post_ra>
